<compile_context>
chip_gen: v6e
topology: v6e:2x2x1
jax: 0.10.0
libtpu: 0.0.40
codegen_flags: <defaults>
</compile_context>

<pallas_src>
import functools

import jax
import jax.numpy as jnp
from jax.experimental import pallas as pl
from jax.experimental.pallas import tpu as pltpu

N_SENTIMENT_CLASSES = 5
LANE = 128
SUBLANE = 8


# ----------------------------------------------------------------------------
# Small helpers (specs / tiles / padding / compiler params)
# ----------------------------------------------------------------------------
def _vmem_limit_bytes():
    """Generation-aware scoped-VMEM budget (~75% of physical), 48 MiB fallback."""
    try:
        cap = int(pltpu.get_tpu_info().vmem_capacity_bytes)
        return max(32 * 1024 * 1024, cap * 3 // 4)
    except Exception:  # pragma: no cover - info query unavailable
        return 48 * 1024 * 1024


_VMEM_LIMIT = _vmem_limit_bytes()


def _compiler_params(n_grid_axes):
    return pltpu.CompilerParams(
        dimension_semantics=("parallel",) * n_grid_axes,
        vmem_limit_bytes=_VMEM_LIMIT)


def _whole_spec(a):
    """Whole-array VMEM block (weights), constant block index across the grid."""
    nd = a.ndim
    return pl.BlockSpec(a.shape, lambda *_: (0,) * nd)


def _round_up(x, m):
    return (x + m - 1) // m * m


def _pad_to(x, axis, multiple):
    size = x.shape[axis]
    pad = (-size) % multiple
    if pad == 0:
        return x
    widths = [(0, 0)] * x.ndim
    widths[axis] = (0, pad)
    return jnp.pad(x, widths)


def _pad_lanes(a, lanes=LANE):
    pad = (-a.shape[-1]) % lanes
    if pad == 0:
        return a
    return jnp.pad(a, [(0, 0)] * (a.ndim - 1) + [(0, pad)])


def _batch_tile(Bp):
    """Bp is a multiple of 8.  Aim for >=2 grid steps when Bp >= 16 (v7x dual-TC)."""
    if Bp < 16:
        return Bp
    t = max(SUBLANE, (Bp // 2) // SUBLANE * SUBLANE)
    while Bp % t:
        t -= SUBLANE
    return t


def _pick_tile(dim, max_tile, unit):
    """dim is a multiple of `unit`; largest multiple of `unit` <= max_tile dividing dim.

    Never falls back to the full dimension (VMEM-OOM safe for e.g. vocab=30522)."""
    if dim <= max_tile:
        return dim
    t = max_tile // unit * unit
    while dim % t:
        t -= unit
    return t


# ----------------------------------------------------------------------------
# In-kernel math bodies (shared by the fused kernels)
# ----------------------------------------------------------------------------
def _mm_bf16(x, w_bf16):
    """(M,K) @ (K,N) bf16 MXU matmul with f32 accumulation."""
    return jax.lax.dot_general(
        x.astype(jnp.bfloat16), w_bf16,
        dimension_numbers=(((1,), (0,)), ((), ())),
        preferred_element_type=jnp.float32)


def _ln(x, g, b, eps=1e-5):
    mu = jnp.mean(x, axis=-1, keepdims=True)
    var = jnp.mean(jnp.square(x - mu), axis=-1, keepdims=True)
    return (x - mu) * jax.lax.rsqrt(var + eps) * g + b


def _masked_mean_pool_mxu(h_ref, m_ref):
    """(tb,S,H) bf16 x (tb,S) f32 -> (tb,H) f32.

    The S-reduction rides the MXU (batched dot_general over S) instead of the XLU;
    the divide rides the EUP (approx reciprocal).  All-zero-mask safe."""
    h = h_ref[...]                                           # (tb, S, H) bf16
    m = m_ref[...]                                           # (tb, S)    f32
    mh = m.astype(h.dtype).reshape(m.shape[0], 1, m.shape[1])
    summed = jnp.einsum("bks,bsh->bkh", mh, h,
                        preferred_element_type=jnp.float32)  # (tb, 1, H)
    summed = summed.reshape(summed.shape[0], summed.shape[2])
    denom = jnp.maximum(jnp.sum(m, axis=1, keepdims=True), 1.0)
    return summed * pl.reciprocal(denom, approx=True)


# Packed small-vector row layout for a ComplexBlock (see make_complex_block_params):
#  0:res_b  1:g1  2:be1  3:b1a  4:b1b  5:g2  6:be2  7:b2a  8:b2b  9:g3 10:be3 11:b3a 12:b3b
def _complex_block_body(x_parts, mat_refs, vec_ref, dims):
    """ComplexBlock (eval mode: dropout = identity).

    `x_parts` is a list of (tb, Ki) f32 chunks whose virtual concat along the lane
    axis is the block input (avoids materializing the (tb, 4H) concat)."""
    in_dim, hid_dim, out_dim = dims
    res_wt, w1a, w1b, w2a, w2b, w3a, w3b = mat_refs
    widths = [int(p.shape[-1]) for p in x_parts]
    offs, o = [], 0
    for w in widths:
        offs.append(o)
        o += w
    assert o == in_dim

    def row(i, width):
        return vec_ref[i:i + 1, :width]

    res_b, b1a = row(0, out_dim), row(3, in_dim)
    b1b, b2a, b2b = row(4, hid_dim), row(7, hid_dim), row(8, hid_dim)
    g2, be2 = row(5, hid_dim), row(6, hid_dim)
    g3, be3, b3a = row(9, hid_dim), row(10, hid_dim), row(11, hid_dim)
    b3b = row(12, out_dim)

    # residual Linear(in, out): K-split accumulation over the parts (no concat)
    residual = None
    for p, off, w in zip(x_parts, offs, widths):
        d = _mm_bf16(p, res_wt[off:off + w, :])
        residual = d if residual is None else residual + d
    residual = residual + res_b

    # layer1: LayerNorm(in) over the virtual concat -> Linear(in,in) -> Linear(in,hid)
    eps = 1e-5
    total = sum(p.sum(axis=-1, keepdims=True) for p in x_parts)
    mu = total * (1.0 / in_dim)
    var = sum(jnp.square(p - mu).sum(axis=-1, keepdims=True)
              for p in x_parts) * (1.0 / in_dim)
    inv = jax.lax.rsqrt(var + eps)
    y = None
    for p, off, w in zip(x_parts, offs, widths):
        g = vec_ref[1:2, off:off + w]
        be = vec_ref[2:3, off:off + w]
        xn = (p - mu) * inv * g + be
        d = _mm_bf16(xn, w1a[off:off + w, :])
        y = d if y is None else y + d
    y = y + b1a
    h = jnp.maximum(_mm_bf16(y, w1b[...]) + b1b, 0.0)

    # layer2: LN -> Linear(hid,hid) -> Linear(hid,hid); ReLU
    h = _mm_bf16(_ln(h, g2, be2), w2a[...]) + b2a
    h = jnp.maximum(_mm_bf16(h, w2b[...]) + b2b, 0.0)

    # layer3: LN -> Linear(hid,hid) -> Linear(hid,out); residual add
    h = _mm_bf16(_ln(h, g3, be3), w3a[...]) + b3a
    h = _mm_bf16(h, w3b[...]) + b3b
    return h + residual


# ----------------------------------------------------------------------------
# Kernels
# ----------------------------------------------------------------------------
def _mean_pool_kernel(h_ref, m_ref, o_ref):
    # Exact f32 path (module's `forward(task='classification')` output).
    h = h_ref[...].astype(jnp.float32)
    m = m_ref[...]
    summed = jnp.sum(h * m[:, :, None], axis=1)
    denom = jnp.maximum(jnp.sum(m, axis=1, keepdims=True), 1.0)
    o_ref[...] = (summed / denom).astype(o_ref.dtype)


def _linear_kernel(x_ref, wt_ref, b_ref, o_ref):
    y = _mm_bf16(x_ref[...], wt_ref[...]) + b_ref[...]
    o_ref[...] = y.astype(o_ref.dtype)


def _pool_prompt_kernel(h_ref, m_ref, wt_ref, b_ref, o_ref):
    pooled = _masked_mean_pool_mxu(h_ref, m_ref)
    o_ref[...] = (_mm_bf16(pooled, wt_ref[...]) + b_ref[...]).astype(o_ref.dtype)


def _pool_cb_head_kernel(h_ref, m_ref,
                         res_wt, w1a, w1b, w2a, w2b, w3a, w3b,
                         vec_ref, hw_ref, hb_ref, o_ref, *, dims):
    pooled = _masked_mean_pool_mxu(h_ref, m_ref)
    h = _complex_block_body([pooled],
                            (res_wt, w1a, w1b, w2a, w2b, w3a, w3b),
                            vec_ref, dims)
    o_ref[...] = (_mm_bf16(h, hw_ref[...]) + hb_ref[...]).astype(o_ref.dtype)


def _pair_head_kernel(h1_ref, m1_ref, h2_ref, m2_ref,
                      res_wt, w1a, w1b, w2a, w2b, w3a, w3b,
                      vec_ref, hw_ref, hb_ref, o_ref, *, dims, act):
    e1 = _masked_mean_pool_mxu(h1_ref, m1_ref)
    e2 = _masked_mean_pool_mxu(h2_ref, m2_ref)
    # maybe_swap realized deterministically as "no swap"; pair features as K-chunks.
    parts = [e1, e2, jnp.abs(e1 - e2), e1 * e2]
    h = _complex_block_body(parts,
                            (res_wt, w1a, w1b, w2a, w2b, w3a, w3b),
                            vec_ref, dims)
    y = _mm_bf16(h, hw_ref[...]) + hb_ref[...]
    if act == "sigmoid_scale5":
        y = jax.nn.sigmoid(y) * float(N_SENTIMENT_CLASSES)
    o_ref[...] = y.astype(o_ref.dtype)


# ----------------------------------------------------------------------------
# pallas_call wrappers
# ----------------------------------------------------------------------------
def masked_mean_pool(hidden, mask):
    B, S, H = hidden.shape
    hp = _pad_to(hidden, 0, SUBLANE)
    mp = _pad_to(mask.astype(jnp.float32), 0, SUBLANE)
    Bp = hp.shape[0]
    tb = _batch_tile(Bp)
    out = pl.pallas_call(
        _mean_pool_kernel,
        out_shape=jax.ShapeDtypeStruct((Bp, H), jnp.float32),
        grid=(Bp // tb,),
        in_specs=[pl.BlockSpec((tb, S, H), lambda i: (i, 0, 0)),
                  pl.BlockSpec((tb, S), lambda i: (i, 0))],
        out_specs=pl.BlockSpec((tb, H), lambda i: (i, 0)),
        compiler_params=_compiler_params(1),
    )(hp, mp)
    return out[:B]


def linear_tiled(x, wt, b, max_tm=256, max_tn=512):
    """x:(M,K) bf16, wt:(K,N) bf16 pre-transposed, b:(1,N) f32 -> (M,N) f32.

    N (padded to 128) on the OUTER grid axis, M innermost: the large (K, tn)
    weight tile stays constant across the inner loop (one weight DMA per N-tile)."""
    M, K = x.shape
    Kw, N = wt.shape
    assert Kw == K and N % LANE == 0
    xp = _pad_to(x, 0, SUBLANE)
    Mp = xp.shape[0]
    tm = _pick_tile(Mp, max_tm, SUBLANE)
    tn = _pick_tile(N, max_tn, LANE)
    out = pl.pallas_call(
        _linear_kernel,
        out_shape=jax.ShapeDtypeStruct((Mp, N), jnp.float32),
        grid=(N // tn, Mp // tm),
        in_specs=[pl.BlockSpec((tm, K), lambda n, m: (m, 0)),
                  pl.BlockSpec((K, tn), lambda n, m: (0, n)),
                  pl.BlockSpec((1, tn), lambda n, m: (0, n))],
        out_specs=pl.BlockSpec((tm, tn), lambda n, m: (m, n)),
        compiler_params=_compiler_params(2),
    )(xp, wt, b)
    return out[:M]


def _prep_head_inputs(hidden, mask):
    hp = _pad_to(hidden.astype(jnp.bfloat16), 0, SUBLANE)
    mp = _pad_to(mask.astype(jnp.float32), 0, SUBLANE)
    return hp, mp


def pool_prompt_head(hidden, mask, wt_pad, b_pad, n_valid):
    B, S, H = hidden.shape
    hp, mp = _prep_head_inputs(hidden, mask)
    Bp = hp.shape[0]
    tb = _batch_tile(Bp)
    out = pl.pallas_call(
        _pool_prompt_kernel,
        out_shape=jax.ShapeDtypeStruct((Bp, LANE), jnp.float32),
        grid=(Bp // tb,),
        in_specs=[pl.BlockSpec((tb, S, H), lambda i: (i, 0, 0)),
                  pl.BlockSpec((tb, S), lambda i: (i, 0)),
                  _whole_spec(wt_pad), _whole_spec(b_pad)],
        out_specs=pl.BlockSpec((tb, LANE), lambda i: (i, 0)),
        compiler_params=_compiler_params(1),
    )(hp, mp, wt_pad, b_pad)
    return out[:B, :n_valid]


def pool_cb_head(hidden, mask, cb, hw_pad, hb_pad, n_valid):
    B, S, H = hidden.shape
    hp, mp = _prep_head_inputs(hidden, mask)
    Bp = hp.shape[0]
    tb = _batch_tile(Bp)
    consts = [*cb["mats"], cb["vec"], hw_pad, hb_pad]
    in_specs = ([pl.BlockSpec((tb, S, H), lambda i: (i, 0, 0)),
                 pl.BlockSpec((tb, S), lambda i: (i, 0))]
                + [_whole_spec(a) for a in consts])
    out = pl.pallas_call(
        functools.partial(_pool_cb_head_kernel, dims=cb["dims"]),
        out_shape=jax.ShapeDtypeStruct((Bp, LANE), jnp.float32),
        grid=(Bp // tb,),
        in_specs=in_specs,
        out_specs=pl.BlockSpec((tb, LANE), lambda i: (i, 0)),
        compiler_params=_compiler_params(1),
    )(hp, mp, *consts)
    return out[:B, :n_valid]


def pair_head(h1, m1, h2, m2, cb, hw_pad, hb_pad, n_valid, act="none"):
    B, S, H = h1.shape
    h1p, m1p = _prep_head_inputs(h1, m1)
    h2p, m2p = _prep_head_inputs(h2, m2)
    Bp = h1p.shape[0]
    tb = _batch_tile(Bp)
    consts = [*cb["mats"], cb["vec"], hw_pad, hb_pad]
    in_specs = ([pl.BlockSpec((tb, S, H), lambda i: (i, 0, 0)),
                 pl.BlockSpec((tb, S), lambda i: (i, 0)),
                 pl.BlockSpec((tb, S, H), lambda i: (i, 0, 0)),
                 pl.BlockSpec((tb, S), lambda i: (i, 0))]
                + [_whole_spec(a) for a in consts])
    out = pl.pallas_call(
        functools.partial(_pair_head_kernel, dims=cb["dims"], act=act),
        out_shape=jax.ShapeDtypeStruct((Bp, LANE), jnp.float32),
        grid=(Bp // tb,),
        in_specs=in_specs,
        out_specs=pl.BlockSpec((tb, LANE), lambda i: (i, 0)),
        compiler_params=_compiler_params(1),
    )(h1p, m1p, h2p, m2p, *consts)
    return out[:B, :n_valid]


# ----------------------------------------------------------------------------
# Parameter construction (deterministic, synthetic)
# ----------------------------------------------------------------------------
def _lin_params(key, out_dim, in_dim, scale=0.05):
    kw, kb = jax.random.split(key)
    w = scale * jax.random.normal(kw, (out_dim, in_dim), jnp.float32)
    b = scale * jax.random.normal(kb, (out_dim,), jnp.float32)
    return w, b


def _pack_w(w):
    """PyTorch W:(out,in) -> bf16 (in,out) pre-transposed weight."""
    return w.T.astype(jnp.bfloat16)


def make_complex_block_params(key, in_dim, hidden_dim, out_dim):
    ks = jax.random.split(key, 7)
    w_res, b_res = _lin_params(ks[0], out_dim, in_dim)
    w1a, b1a = _lin_params(ks[1], in_dim, in_dim)
    w1b, b1b = _lin_params(ks[2], hidden_dim, in_dim)
    w2a, b2a = _lin_params(ks[3], hidden_dim, hidden_dim)
    w2b, b2b = _lin_params(ks[4], hidden_dim, hidden_dim)
    w3a, b3a = _lin_params(ks[5], hidden_dim, hidden_dim)
    w3b, b3b = _lin_params(ks[6], out_dim, hidden_dim)
    g = lambda d: jnp.ones((d,), jnp.float32)
    z = lambda d: jnp.zeros((d,), jnp.float32)
    rows = [b_res, g(in_dim), z(in_dim), b1a, b1b,
            g(hidden_dim), z(hidden_dim), b2a, b2b,
            g(hidden_dim), z(hidden_dim), b3a, b3b]
    W = _round_up(max(in_dim, hidden_dim, out_dim), LANE)
    vec = jnp.zeros((16, W), jnp.float32)
    for i, r in enumerate(rows):
        vec = vec.at[i, :r.shape[0]].set(r)
    mats = tuple(_pack_w(w) for w in (w_res, w1a, w1b, w2a, w2b, w3a, w3b))
    return {"mats": mats, "vec": vec, "dims": (in_dim, hidden_dim, out_dim)}


# ----------------------------------------------------------------------------
# MultitaskBERT heads (JAX/Pallas)
# ----------------------------------------------------------------------------
class MultitaskBERTPallas:
    def __init__(self, key, hidden_size=32, vocab_size=64, cb_hidden=64, cb_out=32):
        self.H = hidden_size
        self.V = vocab_size
        ks = jax.random.split(key, 8)
        # sentiment head: ComplexBlock(H, cb_hidden, cb_out) + Linear(cb_out, 5)
        self.sent_cb = make_complex_block_params(ks[0], hidden_size, cb_hidden, cb_out)
        sw, sb = _lin_params(ks[1], N_SENTIMENT_CLASSES, cb_out)
        self.sent_wt, self.sent_b = _pad_lanes(_pack_w(sw)), _pad_lanes(sb.reshape(1, -1))
        # paraphrase head: ComplexBlock(4H, 4H, cb_out) + Linear(cb_out, 1)
        self.para_cb = make_complex_block_params(ks[2], 4 * hidden_size, 4 * hidden_size, cb_out)
        pw, pb = _lin_params(ks[3], 1, cb_out)
        self.para_wt, self.para_b = _pad_lanes(_pack_w(pw)), _pad_lanes(pb.reshape(1, -1))
        # similarity head: ComplexBlock(4H, 4H, cb_out) + Linear(cb_out, 1)
        self.sim_cb = make_complex_block_params(ks[4], 4 * hidden_size, 4 * hidden_size, cb_out)
        vw, vb = _lin_params(ks[5], 1, cb_out)
        self.sim_wt, self.sim_b = _pad_lanes(_pack_w(vw)), _pad_lanes(vb.reshape(1, -1))
        # task logits + mlm head (vocab padded to a lane-dense multiple of 128)
        self.logits = jnp.array([1.0, 1.0, 1.0], jnp.float32)
        mw, mb = _lin_params(ks[6], vocab_size, hidden_size)
        mlm_wt = _pack_w(mw)                                   # (H, V) bf16
        mlm_b = mb.reshape(1, -1).astype(jnp.float32)          # (1, V) f32
        self.mlm_wt_pad = _pad_lanes(mlm_wt)
        self.mlm_b_pad = _pad_lanes(mlm_b)
        # label word ids (deterministic stand-ins for tokenizer lookups); gather the
        # 5 label rows once wrapper-side instead of projecting to the full vocab.
        self.label_word_ids = jnp.array([3, 7, 11, 15, 19], jnp.int32)
        self.label_wt = _pad_lanes(mlm_wt[:, self.label_word_ids])   # (H, 128) bf16
        self.label_b = _pad_lanes(mlm_b[:, self.label_word_ids])     # (1, 128) f32

    # forward(..., task=...) on a given BERT last_hidden_state
    def forward(self, last_hidden_state, attention_mask, task="classification"):
        if task == "classification":
            return masked_mean_pool(last_hidden_state, attention_mask)
        elif task == "mlm":
            B, S, H = last_hidden_state.shape
            flat = last_hidden_state.reshape(B * S, H).astype(jnp.bfloat16)
            out = linear_tiled(flat, self.mlm_wt_pad, self.mlm_b_pad)
            return out[:, :self.V].reshape(B, S, self.V)
        raise ValueError("Invalid task")

    def get_weights(self):
        return jax.nn.softmax(self.logits, axis=0)     # tiny 3-element softmax: JAX glue

    def predict_sentiment(self, last_hidden_state, attention_mask):
        # Fused: masked mean pool + (label-row) MLM projection -> one kernel.
        return pool_prompt_head(last_hidden_state, attention_mask,
                                self.label_wt, self.label_b, N_SENTIMENT_CLASSES)

    def sentiment_classifier(self, last_hidden_state, attention_mask):
        # Fused: pool + ComplexBlock + Linear(cb_out,5) -> one kernel.
        return pool_cb_head(last_hidden_state, attention_mask,
                            self.sent_cb, self.sent_wt, self.sent_b, N_SENTIMENT_CLASSES)

    def predict_paraphrase(self, lhs1, mask1, lhs2, mask2):
        return pair_head(lhs1, mask1, lhs2, mask2, self.para_cb,
                         self.para_wt, self.para_b, 1, act="none")

    def predict_similarity(self, lhs1, mask1, lhs2, mask2):
        return pair_head(lhs1, mask1, lhs2, mask2, self.sim_cb,
                         self.sim_wt, self.sim_b, 1, act="sigmoid_scale5")


# ----------------------------------------------------------------------------
# main
# ----------------------------------------------------------------------------
if __name__ == "__main__":
    key = jax.random.PRNGKey(0)
    k_model, k_h1, k_h2 = jax.random.split(key, 3)

    B, S, H, V = 2, 8, 32, 64
    model = MultitaskBERTPallas(k_model, hidden_size=H, vocab_size=V)

    # synthetic BERT last_hidden_state for two "sentences" per batch
    lhs1 = jax.random.normal(k_h1, (B, S, H), jnp.float32)
    lhs2 = jax.random.normal(k_h2, (B, S, H), jnp.float32)
    mask1 = jnp.array([[1] * 8, [1] * 5 + [0] * 3], jnp.float32)
    mask2 = jnp.array([[1] * 6 + [0] * 2, [1] * 8], jnp.float32)

    pooled = model.forward(lhs1, mask1, task="classification")            # (2, 32)
    mlm_out = model.forward(lhs1, mask1, task="mlm")                      # (2, 8, 64)
    sent_logits = model.predict_sentiment(lhs1, mask1)                    # (2, 5)
    sent_cls = model.sentiment_classifier(lhs1, mask1)                    # (2, 5)
    para_logits = model.predict_paraphrase(lhs1, mask1, lhs2, mask2)      # (2, 1)
    sim_scores = model.predict_similarity(lhs1, mask1, lhs2, mask2)       # (2, 1)
    task_w = model.get_weights()                                          # (3,)

    for r in (pooled, mlm_out, sent_logits, sent_cls, para_logits, sim_scores, task_w):
        jax.block_until_ready(r)

    # ---- correctness checks vs pure-JAX references (mirroring the bf16 MXU casts) ----
    f32, bf16 = jnp.float32, jnp.bfloat16

    def mm_ref(x, wt, b):
        return x.astype(bf16).astype(f32) @ wt.astype(f32) + b

    def ln_ref(x, g, b, eps=1e-5):
        mu = x.mean(-1, keepdims=True)
        var = ((x - mu) ** 2).mean(-1, keepdims=True)
        return (x - mu) * jax.lax.rsqrt(var + eps) * g + b

    def cb_ref(x, p):
        in_dim, hid, out = p["dims"]
        res_wt, w1a, w1b, w2a, w2b, w3a, w3b = p["mats"]
        v = p["vec"]
        res_b = v[0:1, :out]
        g1, be1, b1a = v[1:2, :in_dim], v[2:3, :in_dim], v[3:4, :in_dim]
        b1b = v[4:5, :hid]
        g2, be2, b2a, b2b = v[5:6, :hid], v[6:7, :hid], v[7:8, :hid], v[8:9, :hid]
        g3, be3, b3a = v[9:10, :hid], v[10:11, :hid], v[11:12, :hid]
        b3b = v[12:13, :out]
        res = mm_ref(x, res_wt, res_b)
        h = mm_ref(mm_ref(ln_ref(x, g1, be1), w1a, b1a), w1b, b1b)
        h = jnp.maximum(h, 0.0)
        h = mm_ref(mm_ref(ln_ref(h, g2, be2), w2a, b2a), w2b, b2b)
        h = jnp.maximum(h, 0.0)
        h = mm_ref(mm_ref(ln_ref(h, g3, be3), w3a, b3a), w3b, b3b)
        return h + res

    def pool_bf16_ref(h, m):
        s = jnp.einsum("bs,bsh->bh", m, h.astype(bf16).astype(f32))
        return s / jnp.maximum(m.sum(1, keepdims=True), 1.0)

    ref_pool1 = (lhs1 * mask1[:, :, None]).sum(1) / jnp.maximum(mask1.sum(1, keepdims=True), 1.0)
    assert jnp.allclose(pooled, ref_pool1, atol=1e-5), "mean pooling mismatch"

    ref_mlm = mm_ref(lhs1.reshape(B * S, H), model.mlm_wt_pad[:, :V], model.mlm_b_pad[:, :V])
    assert jnp.allclose(mlm_out.reshape(B * S, V), ref_mlm, atol=1e-3), "mlm head mismatch"

    e1r = pool_bf16_ref(lhs1, mask1)
    e2r = pool_bf16_ref(lhs2, mask2)

    ref_sent = mm_ref(e1r, model.label_wt, model.label_b)[:, :N_SENTIMENT_CLASSES]
    assert jnp.allclose(sent_logits, ref_sent, atol=1e-2), "prompt sentiment mismatch"

    ref_sent_cls = mm_ref(cb_ref(e1r, model.sent_cb),
                          model.sent_wt, model.sent_b)[:, :N_SENTIMENT_CLASSES]
    assert jnp.allclose(sent_cls, ref_sent_cls, atol=5e-2), "sentiment classifier mismatch"

    feats = jnp.concatenate([e1r, e2r, jnp.abs(e1r - e2r), e1r * e2r], axis=1)
    ref_para = mm_ref(cb_ref(feats, model.para_cb), model.para_wt, model.para_b)[:, :1]
    assert jnp.allclose(para_logits, ref_para, atol=5e-2), "paraphrase head mismatch"

    assert sim_scores.shape == (B, 1)
    assert bool(jnp.all(jnp.isfinite(sent_cls)))
    assert bool(jnp.all((sim_scores >= 0.0) & (sim_scores <= 5.0)))

    print("KERNEL_OK")
</pallas_src>

<mosaic_0001>
module attributes {stable_mosaic.version = 11 : i64} {
  func.func @_mean_pool_kernel(%arg0: i32, %arg1: memref<8x8x32xf32, #tpu.memory_space<vmem>>, %arg2: memref<8x8xf32, #tpu.memory_space<vmem>>, %arg3: memref<8x32xf32, #tpu.memory_space<vmem>>) attributes {dimension_semantics = [#tpu.dimension_semantics<parallel>], iteration_bounds = array<i64: 1>, scalar_prefetch = 0 : i64, scratch_operands = 0 : i64, tpu.core_type = #tpu.core_type<tc>, window_params = [{transform_indices = @transform_0, window_bounds = array<i64: 8, 8, 32>}, {transform_indices = @transform_1, window_bounds = array<i64: 8, 8>}, {transform_indices = @transform_2, window_bounds = array<i64: 8, 32>}]} {
    %c0 = arith.constant 0 : index
    %c0_0 = arith.constant 0 : index
    %c0_1 = arith.constant 0 : index
    %0 = vector.load %arg1[%c0, %c0_0, %c0_1] : memref<8x8x32xf32, #tpu.memory_space<vmem>>, vector<8x8x32xf32>
    %c0_2 = arith.constant 0 : index
    %c0_3 = arith.constant 0 : index
    %1 = vector.load %arg2[%c0_2, %c0_3] : memref<8x8xf32, #tpu.memory_space<vmem>>, vector<8x8xf32>
    %2 = vector.shape_cast %1 : vector<8x8xf32> to vector<8x8x1xf32>
    %3 = vector.broadcast %2 : vector<8x8x1xf32> to vector<8x8x32xf32>
    %4 = arith.mulf %0, %3 : vector<8x8x32xf32>
    %cst = arith.constant dense<0.000000e+00> : vector<8x32xf32>
    %5 = vector.multi_reduction <add>, %4, %cst [1] : vector<8x8x32xf32> to vector<8x32xf32>
    %cst_4 = arith.constant dense<0.000000e+00> : vector<8xf32>
    %6 = vector.multi_reduction <add>, %1, %cst_4 [1] : vector<8x8xf32> to vector<8xf32>
    %7 = vector.shape_cast %6 : vector<8xf32> to vector<8x1xf32>
    %cst_5 = arith.constant 1.000000e+00 : f32
    %8 = vector.broadcast %cst_5 : f32 to vector<8x1xf32>
    %9 = arith.maximumf %7, %8 : vector<8x1xf32>
    %10 = vector.broadcast %9 : vector<8x1xf32> to vector<8x32xf32>
    %11 = arith.divf %5, %10 : vector<8x32xf32>
    %c0_6 = arith.constant 0 : index
    %c0_7 = arith.constant 0 : index
    %12 = vector.load %arg3[%c0_6, %c0_7] : memref<8x32xf32, #tpu.memory_space<vmem>>, vector<8x32xf32>
    tpu.vector_store %arg3[%c0_6, %c0_7], %11 {strides = array<i32>} : memref<8x32xf32, #tpu.memory_space<vmem>>, vector<8x32xf32>,
    return
  }
  func.func @transform_0(%arg0: i32) -> (i32, i32, i32) {
    %c0_i32 = arith.constant 0 : i32
    %c0_i32_0 = arith.constant 0 : i32
    %c0_i32_1 = arith.constant 0 : i32
    return %arg0, %c0_i32, %c0_i32_0 : i32, i32, i32
  }
  func.func @transform_1(%arg0: i32) -> (i32, i32) {
    %c0_i32 = arith.constant 0 : i32
    %c0_i32_0 = arith.constant 0 : i32
    return %arg0, %c0_i32 : i32, i32
  }
  func.func @transform_2(%arg0: i32) -> (i32, i32) {
    %c0_i32 = arith.constant 0 : i32
    %c0_i32_0 = arith.constant 0 : i32
    return %arg0, %c0_i32 : i32, i32
  }
}

</mosaic_0001>

<bundles_post_ra>
// kernel: tpu_custom_call.1
= control target key start
LH: loop header
LB: loop body
LE: loop exit
PB: predicated region body
PF: predicated region fallthrough
CT: control target
= control target key end

     0   :  { %7 = vsyncpa [#allocation3], 0  ;;  %s377_s0 = inlined_call_operand.hbm [shape: f32[8,8,32], index: 0, kind: input, shape index: {}]   ;;  %s378_s1 = inlined_call_operand.hbm [shape: f32[8,8], index: 1, kind: input, shape index: {}]   ;;  %s379_s2 = inlined_call_operand.hbm [shape: f32[8,32], index: 2, kind: output, shape index: {}]  }
   0x1   :  { %8 = vsyncpa [#allocation6], 0 }
   0x2   :  { %9 = vsyncpa [#allocation4], 0  ;;  %s339_s9 = smov [#allocation2]  }
   0x3   :  { %s15_s10 = sshll.u32 %s339_s9, 4  ;;  %s16_s10 = int_to_ptr.vmem [resolvable:$true] %s15_s10 }
   0x4   :  { %s281_s11 = scalar_lea.vmem %s16_s10, 1024  ;;  %p286_p1 = scmp.lt.s32.totalorder %s16_s10, %s16_s10 }
   0x5   :  { %p282_p0 = scmp.ne.s32.totalorder %s16_s10, %s281_s11  ;;  %p287_p2 = scmp.lt.s32.totalorder %s281_s11, %s281_s11 }
   0x7   :  { %p288_p3 = por %p287_p2, %p286_p1 }
   0x9   :  { %p289_p4 = pnand %p288_p3, %p282_p0 }
   0xb   :  { %292 = shalt.err (!%p289_p4)
}
   0xc   :  { %s340_s12 = smov 128   ;;  %s341_s13 = smov 8  }
   0xd   :  { %21 = dma.hbm_to_vmem [thread:$0]  %s377_s0, 1024, %s16_s10, [#allocation3], %s340_s12, %s340_s12, %s341_s13  }
   0xe   :  { %s342_s16 = smov [#allocation5]  }
   0xf   :  { %s28_s17 = sshll.u32 %s342_s16, 4  ;;  %s29_s17 = int_to_ptr.vmem [resolvable:$true] %s28_s17 }
  0x10   :  { %s301_s18 = scalar_lea.vmem %s29_s17, 128  ;;  %p306_p6 = scmp.lt.s32.totalorder %s29_s17, %s29_s17 }
  0x11   :  { %p302_p5 = scmp.ne.s32.totalorder %s29_s17, %s301_s18  ;;  %p307_p7 = scmp.lt.s32.totalorder %s301_s18, %s301_s18 }
  0x13   :  { %p308_p8 = por %p307_p7, %p306_p6 }
  0x15   :  { %p309_p9 = pnand %p308_p8, %p302_p5 }
  0x17   :  { %312 = shalt.err (!%p309_p9)
}
  0x18   :  { %31 = dma.hbm_to_vmem [thread:$0]  %s378_s1, 128, %s29_s17, [#allocation6]  }
  0x19   :  { %333 = dma.done.wait [#allocation3], 1024  }
  0x1a   :  { %334 = vsyncadd [#allocation3], 4294966272 }
  0x1b   :  { %335 = dma.done.wait [#allocation6], 128  }
  0x1c   :  { %336 = vsyncadd [#allocation6], 4294967168  ;;  %v47_v0 = vlaneseq  ;;  %vm168_vm0 = vcmask 64512   ;;  %v46_v4 = vld [vmem:[#allocation5] sm:$0xff]  ;;  %v40_v22 = vld [vmem:[#allocation2 + $0x10] sm:$0xff]  ;;  %vm111_vm1 = vcmask 261120  }
  0x1d   :  { %v169_v5 = vsel %vm168_vm0, %v46_v4, 0.0  ;;  %v38_v24 = vld [vmem:[#allocation2] sm:$0xff]  ;;  %v41_v26 = vld [vmem:[#allocation2 + $0x18] sm:$0xff]  ;;  %v43_v32 = vld [vmem:[#allocation2 + $0x28] sm:$0xff]  ;;  %vm214_vm2 = vcmask 1041409   ;;  %vm217_vm3 = vcmask 1042434  }
  0x1e   :  { %v48_v1 = vshrl.u32 %v47_v0, 7  ;;  %170 = vadd.xlane.f32.xlu0 %v169_v5  ;;  %v42_v29 = vld [vmem:[#allocation2 + $0x20] sm:$0xff]  ;;  %v44_v38 = vld [vmem:[#allocation2 + $0x30] sm:$0xff]  ;;  %v45_v48 = vld [vmem:[#allocation2 + $0x38] sm:$0xff]  ;;  %vm220_vm4 = vcmask 1043459   ;;  %vm223_vm5 = vcmask 1044484  }
  0x1f   :  { %v39_v54 = vld [vmem:[#allocation2 + $0x8] sm:$0xff]  ;;  %vm226_vm6 = vcmask 1045509   ;;  %vm229_vm7 = vcmask 1046534   ;;  %s343_s0 = smov [#allocation7]   ;;  %vm232_vm8 = vcmask 1047559  }
  0x20   :  { %v63_v2 = vsub.s32 2, %v48_v1  ;;  %v49_v3 = vsub.s32 0, %v48_v1  ;;  %v70_v8 = vsub.s32 3, %v48_v1  ;;  %v77_v10 = vsub.s32 4, %v48_v1  ;;  %s242_s1 = sshll.u32 %s343_s0, 4  ;;  %s243_s1 = int_to_ptr.vmem [resolvable:$true] %s242_s1 }
  0x21   :  { %v84_v12 = vsub.s32 5, %v48_v1  ;;  %v91_v14 = vsub.s32 6, %v48_v1  ;;  %v56_v15 = vsub.s32 1, %v48_v1  ;;  %v98_v17 = vsub.s32 7, %v48_v1  ;;  %s313_s21 = scalar_lea.vmem %s243_s1, 128  ;;  %p318_p11 = scmp.lt.s32.totalorder %s243_s1, %s243_s1 }
  0x22   :  { %v64_v6 = vrot.slane %v46_v4, %v63_v2  ;;  %v50_v7 = vrot.slane %v46_v4, %v49_v3  ;;  %v71_v9 = vrot.slane %v46_v4, %v70_v8  ;;  %v78_v11 = vrot.slane %v46_v4, %v77_v10  ;;  %p314_p10 = scmp.ne.s32.totalorder %s243_s1, %s313_s21  ;;  %p319_p12 = scmp.lt.s32.totalorder %s313_s21, %s313_s21 }
  0x23   :  { %v85_v13 = vrot.slane %v46_v4, %v84_v12  ;;  %v92_v16 = vrot.slane %v46_v4, %v91_v14  ;;  %v57_v18 = vrot.slane %v46_v4, %v56_v15  ;;  %v99_v19 = vrot.slane %v46_v4, %v98_v17 }
  0x24   :  { %66 = vbcast.lane.b32.xlu1 %v64_v6, 256  ;;  %p320_p13 = por %p319_p12, %p318_p11 }
  0x26   :  { %p321_p0 = pnand %p320_p13, %p314_p10 }
  0x28   :  { %52 = vbcast.lane.b32.xlu1 %v50_v7, 256 }
  0x2c   :  { %73 = vbcast.lane.b32.xlu1 %v71_v9, 256 }
  0x30   :  { %80 = vbcast.lane.b32.xlu1 %v78_v11, 256 }
  0x34   :  { %87 = vbcast.lane.b32.xlu1 %v85_v13, 256  ;;  %59 = vbcast.lane.b32.xlu0 %v57_v18, 256 }
  0x38   :  { %94 = vbcast.lane.b32.xlu1 %v92_v16, 256 }
  0x3c   :  { %101 = vbcast.lane.b32.xlu1 %v99_v19, 256 }
  0x96   :  { %v67_v20 = vpop.permute.xlu1 %66 }
  0x97   :  { %v105_v25 = vmul.f32 %v67_v20, %v40_v22 }
  0x99   :  { %v126_v30 = vsel %vm111_vm1, %v105_v25, 0.0 }
  0x9a   :  { %v53_v21 = vpop.permute.xlu1 %52  ;;  %v127_v36 = vrot.slane %v126_v30, 4 }
  0x9b   :  { %v103_v28 = vmul.f32 %v53_v21, %v38_v24 }
  0x9c   :  { %v128_v44 = vadd.f32 %v127_v36, %v126_v30 }
  0x9d   :  { %v112_v34 = vsel %vm111_vm1, %v103_v28, 0.0 }
  0x9e   :  { %v74_v23 = vpop.permute.xlu1 %73  ;;  %v113_v40 = vrot.slane %v112_v34, 4  ;;  %v129_v59 = vrot.slane %v128_v44, 2 }
  0x9f   :  { %v106_v31 = vmul.f32 %v74_v23, %v41_v26 }
  0xa0   :  { %v114_v51 = vadd.f32 %v113_v40, %v112_v34  ;;  %v130_v13 = vadd.f32 %v129_v59, %v128_v44 }
  0xa1   :  { %v133_v39 = vsel %vm111_vm1, %v106_v31, 0.0 }
  0xa2   :  { %v81_v27 = vpop.permute.xlu1 %80  ;;  %v134_v45 = vrot.slane %v133_v39, 4  ;;  %v115_v5 = vrot.slane %v114_v51, 2  ;;  %v131_v23 = vrot.slane %v130_v13, 1 }
  0xa3   :  { %v107_v35 = vmul.f32 %v81_v27, %v42_v29 }
  0xa4   :  { %v135_v60 = vadd.f32 %v134_v45, %v133_v39  ;;  %v116_v20 = vadd.f32 %v115_v5, %v114_v51 }
  0xa5   :  { %v140_v42 = vsel %vm111_vm1, %v107_v35, 0.0 }
  0xa6   :  { %v88_v33 = vpop.permute.xlu1 %87  ;;  %v141_v52 = vrot.slane %v140_v42, 4  ;;  %v136_v14 = vrot.slane %v135_v60, 2  ;;  %v117_v29 = vrot.slane %v116_v20, 1 }
  0xa7   :  { %v108_v37 = vmul.f32 %v88_v33, %v43_v32  ;;  %v171_v47 = vpop.xlane.xlu0 %170  ;;  %v132_v33 = vadd.f32 %v131_v23, %v130_v13 }
  0xa8   :  { %v172_v50 = vmax.f32 %v171_v47, 1.0  ;;  %v142_v2 = vadd.f32 %v141_v52, %v140_v42  ;;  %v137_v24 = vadd.f32 %v136_v14, %v135_v60  ;;  %v118_v42 = vadd.f32 %v117_v29, %v116_v20 }
  0xa9   :  { %v147_v46 = vsel %vm111_vm1, %v108_v37, 0.0 }
  0xaa   :  { %v95_v41 = vpop.permute.xlu1 %94  ;;  %v148_v55 = vrot.slane %v147_v46, 4  ;;  %v175_v56 = vrot.slane %v172_v50, 2  ;;  %v174_v58 = vrot.slane %v172_v50, 1  ;;  %257 = vrcp.f32 %v172_v50 }
  0xab   :  { %v109_v43 = vmul.f32 %v95_v41, %v44_v38  ;;  %v60_v62 = vpop.permute.xlu0 %59  ;;  %v176_v1 = vrot.slane %v172_v50, 3  ;;  %v177_v4 = vrot.slane %v172_v50, 4  ;;  %v178_v8 = vrot.slane %v172_v50, 5 }
  0xac   :  { %259 = vrcp.f32 %v175_v56  ;;  %v104_v0 = vmul.f32 %v60_v62, %v39_v54  ;;  %v149_v6 = vadd.f32 %v148_v55, %v147_v46  ;;  %v179_v12 = vrot.slane %v172_v50, 6 }
  0xad   :  { %v154_v49 = vsel %vm111_vm1, %v109_v43, 0.0  ;;  %261 = vrcp.f32 %v174_v58  ;;  %v180_v15 = vrot.slane %v172_v50, 7  ;;  %v143_v16 = vrot.slane %v142_v2, 2 }
  0xae   :  { %v102_v53 = vpop.permute.xlu1 %101  ;;  %v155_v61 = vrot.slane %v154_v49, 4  ;;  %v119_v7 = vsel %vm111_vm1, %v104_v0, 0.0  ;;  %263 = vrcp.f32 %v176_v1  ;;  %v150_v18 = vrot.slane %v149_v6, 2 }
  0xaf   :  { %v110_v57 = vmul.f32 %v102_v53, %v45_v48  ;;  %v120_v11 = vrot.slane %v119_v7, 4  ;;  %265 = vrcp.f32 %v177_v4  ;;  %v144_v25 = vadd.f32 %v143_v16, %v142_v2 }
  0xb0   :  { %v156_v9 = vadd.f32 %v155_v61, %v154_v49  ;;  %267 = vrcp.f32 %v178_v8  ;;  %v151_v27 = vadd.f32 %v150_v18, %v149_v6  ;;  %v138_v34 = vrot.slane %v137_v24, 1 }
  0xb1   :  { %v161_v63 = vsel %vm111_vm1, %v110_v57, 0.0  ;;  %v121_v17 = vadd.f32 %v120_v11, %v119_v7  ;;  %269 = vrcp.f32 %v179_v12  ;;  %v145_v36 = vrot.slane %v144_v25, 1 }
  0xb2   :  { %v162_v3 = vrot.slane %v161_v63, 4  ;;  %v157_v21 = vrot.slane %v156_v9, 2  ;;  %271 = vrcp.f32 %v180_v15  ;;  %v152_v39 = vrot.slane %v151_v27, 1 }
  0xb3   :  { %v122_v22 = vrot.slane %v121_v17, 2  ;;  %v139_v45 = vadd.f32 %v138_v34, %v137_v24  ;;  %v146_v47 = vadd.f32 %v145_v36, %v144_v25 }
  0xb4   :  { %v163_v10 = vadd.f32 %v162_v3, %v161_v63  ;;  %v158_v30 = vadd.f32 %v157_v21, %v156_v9  ;;  %v153_v51 = vadd.f32 %v152_v39, %v151_v27 }
  0xb5   :  { %v123_v26 = vadd.f32 %v122_v22, %v121_v17 }
  0xb6   :  { %v164_v19 = vrot.slane %v163_v10, 2  ;;  %v159_v43 = vrot.slane %v158_v30, 1 }
  0xb7   :  { %v124_v31 = vrot.slane %v123_v26, 1  ;;  %v258_v32 = vpop.eup %257 }
  0xb8   :  { %v165_v28 = vadd.f32 %v164_v19, %v163_v10  ;;  %v190_v48 = vmul.f32 %v258_v32, %v118_v42  ;;  %v160_v56 = vadd.f32 %v159_v43, %v158_v30 }
  0xb9   :  { %v260_v35 = vpop.eup %259  ;;  %v125_v37 = vadd.f32 %v124_v31, %v123_v26 }
  0xba   :  { %v262_v38 = vpop.eup %261  ;;  %v166_v40 = vrot.slane %v165_v28, 1  ;;  %v194_v41 = vmul.f32 %v260_v35, %v132_v33 }
  0xbb   :  { %v192_v44 = vmul.f32 %v262_v38, %v125_v37  ;;  %v264_v46 = vpop.eup %263 }
  0xbc   :  { %v266_v50 = vpop.eup %265  ;;  %v167_v52 = vadd.f32 %v166_v40, %v165_v28  ;;  %v196_v53 = vmul.f32 %v264_v46, %v139_v45  ;;  %v216_v54 = vrot.slane %v194_v41, 6 }
  0xbd   :  { %v213_v49 = vrot.slane %v192_v44, 7  ;;  %v268_v55 = vpop.eup %267  ;;  %v198_v58 = vmul.f32 %v266_v50, %v146_v47 }
  0xbe   :  { %v270_v59 = vpop.eup %269  ;;  %v200_v60 = vmul.f32 %v268_v55, %v153_v51  ;;  %v219_v62 = vrot.slane %v196_v53, 5 }
  0xbf   :  { %v215_v57 = vsel %vm214_vm2, %v213_v49, %v190_v48  ;;  %v272_v63 = vpop.eup %271  ;;  %v202_v0 = vmul.f32 %v270_v59, %v160_v56  ;;  %v222_v1 = vrot.slane %v198_v58, 4 }
  0xc0   :  { %v218_v61 = vsel %vm217_vm3, %v216_v54, %v215_v57  ;;  %v204_v2 = vmul.f32 %v272_v63, %v167_v52  ;;  %v225_v4 = vrot.slane %v200_v60, 3 }
  0xc1   :  { %v221_v3 = vsel %vm220_vm4, %v219_v62, %v218_v61  ;;  %v228_v6 = vrot.slane %v202_v0, 2 }
  0xc2   :  { %v224_v5 = vsel %vm223_vm5, %v222_v1, %v221_v3  ;;  %v231_v8 = vrot.slane %v204_v2, 1 }
  0xc3   :  { %v227_v7 = vsel %vm226_vm6, %v225_v4, %v224_v5 }
  0xc4   :  { %v230_v9 = vsel %vm229_vm7, %v228_v6, %v227_v7 }
  0xc5   :  { %v233_v10 = vsel %vm232_vm8, %v231_v8, %v230_v9 }
  0xc6   :  { %235 = vst.msk [vmem:[#allocation7] sm:$0xff] %vm111_vm1, %v233_v10 }
  0xc7   :  { %324 = shalt.err (!%p321_p0)
}
  0xc8   :  { %245 = dma.vmem_to_hbm [thread:$0]  %s243_s1, 128, %s379_s2, [#allocation4]  }
  0xc9   :  { %337 = dma.done.wait [#allocation4], 128  }
  0xca   :  { %338 = vsyncadd [#allocation4], 4294967168 }
  0xcb   :  { %249 = vsyncpa [#allocation3], 1 }
  0xcc   :  { %250 = vsyncpa [#allocation6], 1 }
  0xcd   :  { %251 = vsyncpa [#allocation4], 1 }

</bundles_post_ra>
